<compile_context>
chip_gen: v7x
topology: tpu7x:2x2x1
jax: 0.10.0
libtpu: 0.0.40
codegen_flags: <defaults>
</compile_context>

<pallas_src>
import jax
import jax.numpy as jnp
from jax.experimental import pallas as pl
from jax.experimental.pallas import tpu as pltpu


def clip_embedding_kernel(tok_ref, table_hbm, pos_ref, out_ref, gather_buf, sems):
    """One grid step = one sequence of T tokens.

    tok_ref:    (B*T,) int32 in SMEM (scalar prefetch; read for DMA addressing)
    table_hbm:  (V, E) embedding table, left in HBM (pl.ANY) -- gathered row by row
    pos_ref:    (T, E) positional embedding, VMEM-resident (constant block)
    out_ref:    (1, T, E) output slab for this sequence
    gather_buf: (T, E) VMEM scratch holding the gathered table rows
    sems:       (T,) DMA semaphores, one per in-flight row gather
    """
    b = pl.program_id(0)
    T, E = gather_buf.shape

    # Issue all T row gathers for this sequence.  They proceed concurrently, so the
    # HBM latency of each small (1, E) transfer is overlapped across the T rows.
    # (T is a small static int; the Python loop unrolls.  For very long sequences a
    #  pl.loop over chunks would bound code size.)
    for r in range(T):
        tok_id = tok_ref[b * T + r]
        pltpu.make_async_copy(
            table_hbm.at[pl.ds(tok_id, 1)],     # (1, E) row of the table in HBM
            gather_buf.at[pl.ds(r, 1)],         # (1, E) destination row in VMEM
            sems.at[r],
        ).start()

    # Wait for all row gathers of this step (byte counts match the copies above).
    for r in range(T):
        pltpu.make_async_copy(
            table_hbm.at[pl.ds(0, 1)],
            gather_buf.at[pl.ds(r, 1)],
            sems.at[r],
        ).wait()

    # Add the positional embedding in f32 (exact even if the table is bf16; the v5e
    # VPU has no bf16 datapath anyway) and store the full lane/sublane-dense slab.
    x = gather_buf[...].astype(jnp.float32) + pos_ref[...].astype(jnp.float32)
    out_ref[...] = x[None].astype(out_ref.dtype)

    # TODO(synk): cross-step double-buffering of gather_buf (prefetch sequence b+1
    # while adding sequence b) would hide the residual per-step gather latency but
    # requires either "arbitrary" semantics or per-core priming; left out to keep the
    # step self-contained and megacore-safe.


def clip_embedding(tokens, emb_table, pos_value):
    """tokens: (B, T) int -> (B, T, E)  (== token_embedding(tokens) + position_value)."""
    B, T = tokens.shape
    V, E = emb_table.shape
    N = B * T

    # Flatten row-major and clamp so a bad id can never drive an OOB gather DMA.
    tok_flat = jnp.clip(tokens.reshape(N), 0, V - 1).astype(jnp.int32)

    itemsize = jnp.dtype(emb_table.dtype).itemsize

    # NOTE: for the production path E should be a multiple of 128 (real CLIP E=768 is);
    # the toy E=32 below is legal only because the block spans the full last dim.
    grid_spec = pltpu.PrefetchScalarGridSpec(
        num_scalar_prefetch=1,                  # tok_flat -> SMEM
        grid=(B,),                              # one sequence per grid step
        in_specs=[
            # Embedding table: raw HBM ref, gathered manually row by row.
            pl.BlockSpec(memory_space=pl.ANY),
            # Positional embedding: one constant (T, E) block, fetched once, resident.
            pl.BlockSpec((T, E), lambda b, tok: (0, 0)),
        ],
        out_specs=pl.BlockSpec((1, T, E), lambda b, tok: (b, 0, 0)),
        scratch_shapes=[
            pltpu.VMEM((T, E), emb_table.dtype),     # gathered rows for this sequence
            pltpu.SemaphoreType.DMA((T,)),           # one sem per in-flight row gather
        ],
    )

    out = pl.pallas_call(
        clip_embedding_kernel,
        out_shape=jax.ShapeDtypeStruct((B, T, E), emb_table.dtype),
        grid_spec=grid_spec,
        compiler_params=pltpu.CompilerParams(
            dimension_semantics=("parallel",),   # sequences independent (megacore on v7x)
        ),
        cost_estimate=pl.CostEstimate(
            flops=N * E,                                         # one add per element
            transcendentals=0,
            bytes_accessed=(N * E + T * E + N * E) * itemsize,   # gather + pos(once) + store
        ),
    )(tok_flat, emb_table, pos_value)

    return out


if __name__ == "__main__":
    # Small shapes consistent with the module's forward.
    n_vocab, n_embd, n_token = 64, 32, 8
    batch = 2

    key = jax.random.PRNGKey(0)
    k_emb, k_pos, k_tok = jax.random.split(key, 3)

    # nn.Embedding default init ~ N(0, 1).  position_value is zero-initialized in
    # __init__ but learnable; use small random values so the additive path is exercised.
    emb_table = jax.random.normal(k_emb, (n_vocab, n_embd), dtype=jnp.float32)
    pos_value = 0.01 * jax.random.normal(k_pos, (n_token, n_embd), dtype=jnp.float32)
    tokens = jax.random.randint(k_tok, (batch, n_token), 0, n_vocab, dtype=jnp.int32)

    out = clip_embedding(tokens, emb_table, pos_value)
    out = jax.block_until_ready(out)

    # Plain-JAX reference check.
    ref = jnp.take(emb_table, tokens, axis=0) + pos_value[None, :, :]
    assert out.shape == (batch, n_token, n_embd)
    assert jnp.allclose(out, ref, atol=1e-6), float(jnp.max(jnp.abs(out - ref)))

    print("KERNEL_OK")
</pallas_src>

<mosaic_0001>
module attributes {stable_mosaic.version = 11 : i64} {
  func.func @clip_embedding_kernel(%arg0: i32, %arg1: memref<16xi32, #tpu.memory_space<smem>>, %arg2: memref<64x32xf32, #tpu.memory_space<any>>, %arg3: memref<8x32xf32, #tpu.memory_space<vmem>>, %arg4: memref<1x8x32xf32, #tpu.memory_space<vmem>>, %arg5: memref<8x32xf32, #tpu.memory_space<vmem>>, %arg6: memref<8x!tpu.dma_semaphore, #tpu.memory_space<semaphore_mem>>) attributes {dimension_semantics = [#tpu.dimension_semantics<parallel>], iteration_bounds = array<i64: 2>, scalar_prefetch = 1 : i64, scratch_operands = 2 : i64, tpu.core_type = #tpu.core_type<tc>, window_params = [{}, {pipeline_mode = #tpu.pipeline_mode<synchronous>, transform_indices = @transform_1, window_bounds = array<i64: 8, 32>}, {transform_indices = @transform_2, window_bounds = array<i64: 1, 8, 32>}]} {
    %c8_i32 = arith.constant 8 : i32
    %0 = arith.muli %arg0, %c8_i32 : i32
    %c0_i32 = arith.constant 0 : i32
    %1 = arith.addi %0, %c0_i32 : i32
    %2 = arith.index_cast %1 : i32 to index
    %3 = memref.load %arg1[%2] : memref<16xi32, #tpu.memory_space<smem>>
    %c0_i32_0 = arith.constant 0 : i32
    %c0_i32_1 = arith.constant 0 : i32
    %4 = tpu.memref_slice %arg2[%3, %c0_i32_1] : memref<64x32xf32, #tpu.memory_space<any>> -> memref<1x32xf32, #tpu.memory_space<any>>
    %c0_i32_2 = arith.constant 0 : i32
    %c0_i32_3 = arith.constant 0 : i32
    %5 = tpu.memref_slice %arg5[%c0_i32_2, %c0_i32_3] : memref<8x32xf32, #tpu.memory_space<vmem>> -> memref<1x32xf32, #tpu.memory_space<vmem>>
    %6 = tpu.memref_slice %arg6[%c0_i32_0] : memref<8x!tpu.dma_semaphore, #tpu.memory_space<semaphore_mem>> -> memref<1x!tpu.dma_semaphore, #tpu.memory_space<semaphore_mem>>
    %7 = tpu.memref_squeeze %6 : memref<1x!tpu.dma_semaphore, #tpu.memory_space<semaphore_mem>> -> memref<!tpu.dma_semaphore, #tpu.memory_space<semaphore_mem>>
    tpu.enqueue_dma source(%4 : memref<1x32xf32, #tpu.memory_space<any>>) target(%5 : memref<1x32xf32, #tpu.memory_space<vmem>>) target_semaphore(%7 : memref<!tpu.dma_semaphore, #tpu.memory_space<semaphore_mem>>)
    %c8_i32_4 = arith.constant 8 : i32
    %8 = arith.muli %arg0, %c8_i32_4 : i32
    %c1_i32 = arith.constant 1 : i32
    %9 = arith.addi %8, %c1_i32 : i32
    %10 = arith.index_cast %9 : i32 to index
    %11 = memref.load %arg1[%10] : memref<16xi32, #tpu.memory_space<smem>>
    %c1_i32_5 = arith.constant 1 : i32
    %c0_i32_6 = arith.constant 0 : i32
    %12 = tpu.memref_slice %arg2[%11, %c0_i32_6] : memref<64x32xf32, #tpu.memory_space<any>> -> memref<1x32xf32, #tpu.memory_space<any>>
    %c1_i32_7 = arith.constant 1 : i32
    %c0_i32_8 = arith.constant 0 : i32
    %13 = tpu.memref_slice %arg5[%c1_i32_7, %c0_i32_8] : memref<8x32xf32, #tpu.memory_space<vmem>> -> memref<1x32xf32, #tpu.memory_space<vmem>>
    %14 = tpu.memref_slice %arg6[%c1_i32_5] : memref<8x!tpu.dma_semaphore, #tpu.memory_space<semaphore_mem>> -> memref<1x!tpu.dma_semaphore, #tpu.memory_space<semaphore_mem>>
    %15 = tpu.memref_squeeze %14 : memref<1x!tpu.dma_semaphore, #tpu.memory_space<semaphore_mem>> -> memref<!tpu.dma_semaphore, #tpu.memory_space<semaphore_mem>>
    tpu.enqueue_dma source(%12 : memref<1x32xf32, #tpu.memory_space<any>>) target(%13 : memref<1x32xf32, #tpu.memory_space<vmem>>) target_semaphore(%15 : memref<!tpu.dma_semaphore, #tpu.memory_space<semaphore_mem>>)
    %c8_i32_9 = arith.constant 8 : i32
    %16 = arith.muli %arg0, %c8_i32_9 : i32
    %c2_i32 = arith.constant 2 : i32
    %17 = arith.addi %16, %c2_i32 : i32
    %18 = arith.index_cast %17 : i32 to index
    %19 = memref.load %arg1[%18] : memref<16xi32, #tpu.memory_space<smem>>
    %c2_i32_10 = arith.constant 2 : i32
    %c0_i32_11 = arith.constant 0 : i32
    %20 = tpu.memref_slice %arg2[%19, %c0_i32_11] : memref<64x32xf32, #tpu.memory_space<any>> -> memref<1x32xf32, #tpu.memory_space<any>>
    %c2_i32_12 = arith.constant 2 : i32
    %c0_i32_13 = arith.constant 0 : i32
    %21 = tpu.memref_slice %arg5[%c2_i32_12, %c0_i32_13] : memref<8x32xf32, #tpu.memory_space<vmem>> -> memref<1x32xf32, #tpu.memory_space<vmem>>
    %22 = tpu.memref_slice %arg6[%c2_i32_10] : memref<8x!tpu.dma_semaphore, #tpu.memory_space<semaphore_mem>> -> memref<1x!tpu.dma_semaphore, #tpu.memory_space<semaphore_mem>>
    %23 = tpu.memref_squeeze %22 : memref<1x!tpu.dma_semaphore, #tpu.memory_space<semaphore_mem>> -> memref<!tpu.dma_semaphore, #tpu.memory_space<semaphore_mem>>
    tpu.enqueue_dma source(%20 : memref<1x32xf32, #tpu.memory_space<any>>) target(%21 : memref<1x32xf32, #tpu.memory_space<vmem>>) target_semaphore(%23 : memref<!tpu.dma_semaphore, #tpu.memory_space<semaphore_mem>>)
    %c8_i32_14 = arith.constant 8 : i32
    %24 = arith.muli %arg0, %c8_i32_14 : i32
    %c3_i32 = arith.constant 3 : i32
    %25 = arith.addi %24, %c3_i32 : i32
    %26 = arith.index_cast %25 : i32 to index
    %27 = memref.load %arg1[%26] : memref<16xi32, #tpu.memory_space<smem>>
    %c3_i32_15 = arith.constant 3 : i32
    %c0_i32_16 = arith.constant 0 : i32
    %28 = tpu.memref_slice %arg2[%27, %c0_i32_16] : memref<64x32xf32, #tpu.memory_space<any>> -> memref<1x32xf32, #tpu.memory_space<any>>
    %c3_i32_17 = arith.constant 3 : i32
    %c0_i32_18 = arith.constant 0 : i32
    %29 = tpu.memref_slice %arg5[%c3_i32_17, %c0_i32_18] : memref<8x32xf32, #tpu.memory_space<vmem>> -> memref<1x32xf32, #tpu.memory_space<vmem>>
    %30 = tpu.memref_slice %arg6[%c3_i32_15] : memref<8x!tpu.dma_semaphore, #tpu.memory_space<semaphore_mem>> -> memref<1x!tpu.dma_semaphore, #tpu.memory_space<semaphore_mem>>
    %31 = tpu.memref_squeeze %30 : memref<1x!tpu.dma_semaphore, #tpu.memory_space<semaphore_mem>> -> memref<!tpu.dma_semaphore, #tpu.memory_space<semaphore_mem>>
    tpu.enqueue_dma source(%28 : memref<1x32xf32, #tpu.memory_space<any>>) target(%29 : memref<1x32xf32, #tpu.memory_space<vmem>>) target_semaphore(%31 : memref<!tpu.dma_semaphore, #tpu.memory_space<semaphore_mem>>)
    %c8_i32_19 = arith.constant 8 : i32
    %32 = arith.muli %arg0, %c8_i32_19 : i32
    %c4_i32 = arith.constant 4 : i32
    %33 = arith.addi %32, %c4_i32 : i32
    %34 = arith.index_cast %33 : i32 to index
    %35 = memref.load %arg1[%34] : memref<16xi32, #tpu.memory_space<smem>>
    %c4_i32_20 = arith.constant 4 : i32
    %c0_i32_21 = arith.constant 0 : i32
    %36 = tpu.memref_slice %arg2[%35, %c0_i32_21] : memref<64x32xf32, #tpu.memory_space<any>> -> memref<1x32xf32, #tpu.memory_space<any>>
    %c4_i32_22 = arith.constant 4 : i32
    %c0_i32_23 = arith.constant 0 : i32
    %37 = tpu.memref_slice %arg5[%c4_i32_22, %c0_i32_23] : memref<8x32xf32, #tpu.memory_space<vmem>> -> memref<1x32xf32, #tpu.memory_space<vmem>>
    %38 = tpu.memref_slice %arg6[%c4_i32_20] : memref<8x!tpu.dma_semaphore, #tpu.memory_space<semaphore_mem>> -> memref<1x!tpu.dma_semaphore, #tpu.memory_space<semaphore_mem>>
    %39 = tpu.memref_squeeze %38 : memref<1x!tpu.dma_semaphore, #tpu.memory_space<semaphore_mem>> -> memref<!tpu.dma_semaphore, #tpu.memory_space<semaphore_mem>>
    tpu.enqueue_dma source(%36 : memref<1x32xf32, #tpu.memory_space<any>>) target(%37 : memref<1x32xf32, #tpu.memory_space<vmem>>) target_semaphore(%39 : memref<!tpu.dma_semaphore, #tpu.memory_space<semaphore_mem>>)
    %c8_i32_24 = arith.constant 8 : i32
    %40 = arith.muli %arg0, %c8_i32_24 : i32
    %c5_i32 = arith.constant 5 : i32
    %41 = arith.addi %40, %c5_i32 : i32
    %42 = arith.index_cast %41 : i32 to index
    %43 = memref.load %arg1[%42] : memref<16xi32, #tpu.memory_space<smem>>
    %c5_i32_25 = arith.constant 5 : i32
    %c0_i32_26 = arith.constant 0 : i32
    %44 = tpu.memref_slice %arg2[%43, %c0_i32_26] : memref<64x32xf32, #tpu.memory_space<any>> -> memref<1x32xf32, #tpu.memory_space<any>>
    %c5_i32_27 = arith.constant 5 : i32
    %c0_i32_28 = arith.constant 0 : i32
    %45 = tpu.memref_slice %arg5[%c5_i32_27, %c0_i32_28] : memref<8x32xf32, #tpu.memory_space<vmem>> -> memref<1x32xf32, #tpu.memory_space<vmem>>
    %46 = tpu.memref_slice %arg6[%c5_i32_25] : memref<8x!tpu.dma_semaphore, #tpu.memory_space<semaphore_mem>> -> memref<1x!tpu.dma_semaphore, #tpu.memory_space<semaphore_mem>>
    %47 = tpu.memref_squeeze %46 : memref<1x!tpu.dma_semaphore, #tpu.memory_space<semaphore_mem>> -> memref<!tpu.dma_semaphore, #tpu.memory_space<semaphore_mem>>
    tpu.enqueue_dma source(%44 : memref<1x32xf32, #tpu.memory_space<any>>) target(%45 : memref<1x32xf32, #tpu.memory_space<vmem>>) target_semaphore(%47 : memref<!tpu.dma_semaphore, #tpu.memory_space<semaphore_mem>>)
    %c8_i32_29 = arith.constant 8 : i32
    %48 = arith.muli %arg0, %c8_i32_29 : i32
    %c6_i32 = arith.constant 6 : i32
    %49 = arith.addi %48, %c6_i32 : i32
    %50 = arith.index_cast %49 : i32 to index
    %51 = memref.load %arg1[%50] : memref<16xi32, #tpu.memory_space<smem>>
    %c6_i32_30 = arith.constant 6 : i32
    %c0_i32_31 = arith.constant 0 : i32
    %52 = tpu.memref_slice %arg2[%51, %c0_i32_31] : memref<64x32xf32, #tpu.memory_space<any>> -> memref<1x32xf32, #tpu.memory_space<any>>
    %c6_i32_32 = arith.constant 6 : i32
    %c0_i32_33 = arith.constant 0 : i32
    %53 = tpu.memref_slice %arg5[%c6_i32_32, %c0_i32_33] : memref<8x32xf32, #tpu.memory_space<vmem>> -> memref<1x32xf32, #tpu.memory_space<vmem>>
    %54 = tpu.memref_slice %arg6[%c6_i32_30] : memref<8x!tpu.dma_semaphore, #tpu.memory_space<semaphore_mem>> -> memref<1x!tpu.dma_semaphore, #tpu.memory_space<semaphore_mem>>
    %55 = tpu.memref_squeeze %54 : memref<1x!tpu.dma_semaphore, #tpu.memory_space<semaphore_mem>> -> memref<!tpu.dma_semaphore, #tpu.memory_space<semaphore_mem>>
    tpu.enqueue_dma source(%52 : memref<1x32xf32, #tpu.memory_space<any>>) target(%53 : memref<1x32xf32, #tpu.memory_space<vmem>>) target_semaphore(%55 : memref<!tpu.dma_semaphore, #tpu.memory_space<semaphore_mem>>)
    %c8_i32_34 = arith.constant 8 : i32
    %56 = arith.muli %arg0, %c8_i32_34 : i32
    %c7_i32 = arith.constant 7 : i32
    %57 = arith.addi %56, %c7_i32 : i32
    %58 = arith.index_cast %57 : i32 to index
    %59 = memref.load %arg1[%58] : memref<16xi32, #tpu.memory_space<smem>>
    %c7_i32_35 = arith.constant 7 : i32
    %c0_i32_36 = arith.constant 0 : i32
    %60 = tpu.memref_slice %arg2[%59, %c0_i32_36] : memref<64x32xf32, #tpu.memory_space<any>> -> memref<1x32xf32, #tpu.memory_space<any>>
    %c7_i32_37 = arith.constant 7 : i32
    %c0_i32_38 = arith.constant 0 : i32
    %61 = tpu.memref_slice %arg5[%c7_i32_37, %c0_i32_38] : memref<8x32xf32, #tpu.memory_space<vmem>> -> memref<1x32xf32, #tpu.memory_space<vmem>>
    %62 = tpu.memref_slice %arg6[%c7_i32_35] : memref<8x!tpu.dma_semaphore, #tpu.memory_space<semaphore_mem>> -> memref<1x!tpu.dma_semaphore, #tpu.memory_space<semaphore_mem>>
    %63 = tpu.memref_squeeze %62 : memref<1x!tpu.dma_semaphore, #tpu.memory_space<semaphore_mem>> -> memref<!tpu.dma_semaphore, #tpu.memory_space<semaphore_mem>>
    tpu.enqueue_dma source(%60 : memref<1x32xf32, #tpu.memory_space<any>>) target(%61 : memref<1x32xf32, #tpu.memory_space<vmem>>) target_semaphore(%63 : memref<!tpu.dma_semaphore, #tpu.memory_space<semaphore_mem>>)
    %c0_i32_39 = arith.constant 0 : i32
    %c0_i32_40 = arith.constant 0 : i32
    %c0_i32_41 = arith.constant 0 : i32
    %64 = tpu.memref_slice %arg2[%c0_i32_40, %c0_i32_41] : memref<64x32xf32, #tpu.memory_space<any>> -> memref<1x32xf32, #tpu.memory_space<any>>
    %c0_i32_42 = arith.constant 0 : i32
    %c0_i32_43 = arith.constant 0 : i32
    %65 = tpu.memref_slice %arg5[%c0_i32_42, %c0_i32_43] : memref<8x32xf32, #tpu.memory_space<vmem>> -> memref<1x32xf32, #tpu.memory_space<vmem>>
    %66 = tpu.memref_slice %arg6[%c0_i32_39] : memref<8x!tpu.dma_semaphore, #tpu.memory_space<semaphore_mem>> -> memref<1x!tpu.dma_semaphore, #tpu.memory_space<semaphore_mem>>
    %67 = tpu.memref_squeeze %66 : memref<1x!tpu.dma_semaphore, #tpu.memory_space<semaphore_mem>> -> memref<!tpu.dma_semaphore, #tpu.memory_space<semaphore_mem>>
    tpu.wait_dma2 semaphore(%67 : memref<!tpu.dma_semaphore, #tpu.memory_space<semaphore_mem>>) src(%64 : memref<1x32xf32, #tpu.memory_space<any>>) dst(%65 : memref<1x32xf32, #tpu.memory_space<vmem>>)
    %c1_i32_44 = arith.constant 1 : i32
    %c0_i32_45 = arith.constant 0 : i32
    %c0_i32_46 = arith.constant 0 : i32
    %68 = tpu.memref_slice %arg2[%c0_i32_45, %c0_i32_46] : memref<64x32xf32, #tpu.memory_space<any>> -> memref<1x32xf32, #tpu.memory_space<any>>
    %c1_i32_47 = arith.constant 1 : i32
    %c0_i32_48 = arith.constant 0 : i32
    %69 = tpu.memref_slice %arg5[%c1_i32_47, %c0_i32_48] : memref<8x32xf32, #tpu.memory_space<vmem>> -> memref<1x32xf32, #tpu.memory_space<vmem>>
    %70 = tpu.memref_slice %arg6[%c1_i32_44] : memref<8x!tpu.dma_semaphore, #tpu.memory_space<semaphore_mem>> -> memref<1x!tpu.dma_semaphore, #tpu.memory_space<semaphore_mem>>
    %71 = tpu.memref_squeeze %70 : memref<1x!tpu.dma_semaphore, #tpu.memory_space<semaphore_mem>> -> memref<!tpu.dma_semaphore, #tpu.memory_space<semaphore_mem>>
    tpu.wait_dma2 semaphore(%71 : memref<!tpu.dma_semaphore, #tpu.memory_space<semaphore_mem>>) src(%68 : memref<1x32xf32, #tpu.memory_space<any>>) dst(%69 : memref<1x32xf32, #tpu.memory_space<vmem>>)
    %c2_i32_49 = arith.constant 2 : i32
    %c0_i32_50 = arith.constant 0 : i32
    %c0_i32_51 = arith.constant 0 : i32
    %72 = tpu.memref_slice %arg2[%c0_i32_50, %c0_i32_51] : memref<64x32xf32, #tpu.memory_space<any>> -> memref<1x32xf32, #tpu.memory_space<any>>
    %c2_i32_52 = arith.constant 2 : i32
    %c0_i32_53 = arith.constant 0 : i32
    %73 = tpu.memref_slice %arg5[%c2_i32_52, %c0_i32_53] : memref<8x32xf32, #tpu.memory_space<vmem>> -> memref<1x32xf32, #tpu.memory_space<vmem>>
    %74 = tpu.memref_slice %arg6[%c2_i32_49] : memref<8x!tpu.dma_semaphore, #tpu.memory_space<semaphore_mem>> -> memref<1x!tpu.dma_semaphore, #tpu.memory_space<semaphore_mem>>
    %75 = tpu.memref_squeeze %74 : memref<1x!tpu.dma_semaphore, #tpu.memory_space<semaphore_mem>> -> memref<!tpu.dma_semaphore, #tpu.memory_space<semaphore_mem>>
    tpu.wait_dma2 semaphore(%75 : memref<!tpu.dma_semaphore, #tpu.memory_space<semaphore_mem>>) src(%72 : memref<1x32xf32, #tpu.memory_space<any>>) dst(%73 : memref<1x32xf32, #tpu.memory_space<vmem>>)
    %c3_i32_54 = arith.constant 3 : i32
    %c0_i32_55 = arith.constant 0 : i32
    %c0_i32_56 = arith.constant 0 : i32
    %76 = tpu.memref_slice %arg2[%c0_i32_55, %c0_i32_56] : memref<64x32xf32, #tpu.memory_space<any>> -> memref<1x32xf32, #tpu.memory_space<any>>
    %c3_i32_57 = arith.constant 3 : i32
    %c0_i32_58 = arith.constant 0 : i32
    %77 = tpu.memref_slice %arg5[%c3_i32_57, %c0_i32_58] : memref<8x32xf32, #tpu.memory_space<vmem>> -> memref<1x32xf32, #tpu.memory_space<vmem>>
    %78 = tpu.memref_slice %arg6[%c3_i32_54] : memref<8x!tpu.dma_semaphore, #tpu.memory_space<semaphore_mem>> -> memref<1x!tpu.dma_semaphore, #tpu.memory_space<semaphore_mem>>
    %79 = tpu.memref_squeeze %78 : memref<1x!tpu.dma_semaphore, #tpu.memory_space<semaphore_mem>> -> memref<!tpu.dma_semaphore, #tpu.memory_space<semaphore_mem>>
    tpu.wait_dma2 semaphore(%79 : memref<!tpu.dma_semaphore, #tpu.memory_space<semaphore_mem>>) src(%76 : memref<1x32xf32, #tpu.memory_space<any>>) dst(%77 : memref<1x32xf32, #tpu.memory_space<vmem>>)
    %c4_i32_59 = arith.constant 4 : i32
    %c0_i32_60 = arith.constant 0 : i32
    %c0_i32_61 = arith.constant 0 : i32
    %80 = tpu.memref_slice %arg2[%c0_i32_60, %c0_i32_61] : memref<64x32xf32, #tpu.memory_space<any>> -> memref<1x32xf32, #tpu.memory_space<any>>
    %c4_i32_62 = arith.constant 4 : i32
    %c0_i32_63 = arith.constant 0 : i32
    %81 = tpu.memref_slice %arg5[%c4_i32_62, %c0_i32_63] : memref<8x32xf32, #tpu.memory_space<vmem>> -> memref<1x32xf32, #tpu.memory_space<vmem>>
    %82 = tpu.memref_slice %arg6[%c4_i32_59] : memref<8x!tpu.dma_semaphore, #tpu.memory_space<semaphore_mem>> -> memref<1x!tpu.dma_semaphore, #tpu.memory_space<semaphore_mem>>
    %83 = tpu.memref_squeeze %82 : memref<1x!tpu.dma_semaphore, #tpu.memory_space<semaphore_mem>> -> memref<!tpu.dma_semaphore, #tpu.memory_space<semaphore_mem>>
    tpu.wait_dma2 semaphore(%83 : memref<!tpu.dma_semaphore, #tpu.memory_space<semaphore_mem>>) src(%80 : memref<1x32xf32, #tpu.memory_space<any>>) dst(%81 : memref<1x32xf32, #tpu.memory_space<vmem>>)
    %c5_i32_64 = arith.constant 5 : i32
    %c0_i32_65 = arith.constant 0 : i32
    %c0_i32_66 = arith.constant 0 : i32
    %84 = tpu.memref_slice %arg2[%c0_i32_65, %c0_i32_66] : memref<64x32xf32, #tpu.memory_space<any>> -> memref<1x32xf32, #tpu.memory_space<any>>
    %c5_i32_67 = arith.constant 5 : i32
    %c0_i32_68 = arith.constant 0 : i32
    %85 = tpu.memref_slice %arg5[%c5_i32_67, %c0_i32_68] : memref<8x32xf32, #tpu.memory_space<vmem>> -> memref<1x32xf32, #tpu.memory_space<vmem>>
    %86 = tpu.memref_slice %arg6[%c5_i32_64] : memref<8x!tpu.dma_semaphore, #tpu.memory_space<semaphore_mem>> -> memref<1x!tpu.dma_semaphore, #tpu.memory_space<semaphore_mem>>
    %87 = tpu.memref_squeeze %86 : memref<1x!tpu.dma_semaphore, #tpu.memory_space<semaphore_mem>> -> memref<!tpu.dma_semaphore, #tpu.memory_space<semaphore_mem>>
    tpu.wait_dma2 semaphore(%87 : memref<!tpu.dma_semaphore, #tpu.memory_space<semaphore_mem>>) src(%84 : memref<1x32xf32, #tpu.memory_space<any>>) dst(%85 : memref<1x32xf32, #tpu.memory_space<vmem>>)
    %c6_i32_69 = arith.constant 6 : i32
    %c0_i32_70 = arith.constant 0 : i32
    %c0_i32_71 = arith.constant 0 : i32
    %88 = tpu.memref_slice %arg2[%c0_i32_70, %c0_i32_71] : memref<64x32xf32, #tpu.memory_space<any>> -> memref<1x32xf32, #tpu.memory_space<any>>
    %c6_i32_72 = arith.constant 6 : i32
    %c0_i32_73 = arith.constant 0 : i32
    %89 = tpu.memref_slice %arg5[%c6_i32_72, %c0_i32_73] : memref<8x32xf32, #tpu.memory_space<vmem>> -> memref<1x32xf32, #tpu.memory_space<vmem>>
    %90 = tpu.memref_slice %arg6[%c6_i32_69] : memref<8x!tpu.dma_semaphore, #tpu.memory_space<semaphore_mem>> -> memref<1x!tpu.dma_semaphore, #tpu.memory_space<semaphore_mem>>
    %91 = tpu.memref_squeeze %90 : memref<1x!tpu.dma_semaphore, #tpu.memory_space<semaphore_mem>> -> memref<!tpu.dma_semaphore, #tpu.memory_space<semaphore_mem>>
    tpu.wait_dma2 semaphore(%91 : memref<!tpu.dma_semaphore, #tpu.memory_space<semaphore_mem>>) src(%88 : memref<1x32xf32, #tpu.memory_space<any>>) dst(%89 : memref<1x32xf32, #tpu.memory_space<vmem>>)
    %c7_i32_74 = arith.constant 7 : i32
    %c0_i32_75 = arith.constant 0 : i32
    %c0_i32_76 = arith.constant 0 : i32
    %92 = tpu.memref_slice %arg2[%c0_i32_75, %c0_i32_76] : memref<64x32xf32, #tpu.memory_space<any>> -> memref<1x32xf32, #tpu.memory_space<any>>
    %c7_i32_77 = arith.constant 7 : i32
    %c0_i32_78 = arith.constant 0 : i32
    %93 = tpu.memref_slice %arg5[%c7_i32_77, %c0_i32_78] : memref<8x32xf32, #tpu.memory_space<vmem>> -> memref<1x32xf32, #tpu.memory_space<vmem>>
    %94 = tpu.memref_slice %arg6[%c7_i32_74] : memref<8x!tpu.dma_semaphore, #tpu.memory_space<semaphore_mem>> -> memref<1x!tpu.dma_semaphore, #tpu.memory_space<semaphore_mem>>
    %95 = tpu.memref_squeeze %94 : memref<1x!tpu.dma_semaphore, #tpu.memory_space<semaphore_mem>> -> memref<!tpu.dma_semaphore, #tpu.memory_space<semaphore_mem>>
    tpu.wait_dma2 semaphore(%95 : memref<!tpu.dma_semaphore, #tpu.memory_space<semaphore_mem>>) src(%92 : memref<1x32xf32, #tpu.memory_space<any>>) dst(%93 : memref<1x32xf32, #tpu.memory_space<vmem>>)
    %c0 = arith.constant 0 : index
    %c0_79 = arith.constant 0 : index
    %96 = vector.load %arg5[%c0, %c0_79] : memref<8x32xf32, #tpu.memory_space<vmem>>, vector<8x32xf32>
    %c0_80 = arith.constant 0 : index
    %c0_81 = arith.constant 0 : index
    %97 = vector.load %arg3[%c0_80, %c0_81] : memref<8x32xf32, #tpu.memory_space<vmem>>, vector<8x32xf32>
    %98 = arith.addf %96, %97 : vector<8x32xf32>
    %99 = vector.shape_cast %98 : vector<8x32xf32> to vector<1x8x32xf32>
    %c0_82 = arith.constant 0 : index
    %c0_83 = arith.constant 0 : index
    %c0_84 = arith.constant 0 : index
    %100 = vector.load %arg4[%c0_82, %c0_83, %c0_84] : memref<1x8x32xf32, #tpu.memory_space<vmem>>, vector<1x8x32xf32>
    tpu.vector_store %arg4[%c0_82, %c0_83, %c0_84], %99 {strides = array<i32>} : memref<1x8x32xf32, #tpu.memory_space<vmem>>, vector<1x8x32xf32>,
    return
  }
  func.func @transform_1(%arg0: i32, %arg1: memref<16xi32, #tpu.memory_space<smem>>) -> (i32, i32) {
    %c0_i32 = arith.constant 0 : i32
    %c0_i32_0 = arith.constant 0 : i32
    %c0_i32_1 = arith.constant 0 : i32
    return %c0_i32, %c0_i32_0 : i32, i32
  }
  func.func @transform_2(%arg0: i32, %arg1: memref<16xi32, #tpu.memory_space<smem>>) -> (i32, i32, i32) {
    %c0_i32 = arith.constant 0 : i32
    %c0_i32_0 = arith.constant 0 : i32
    %c0_i32_1 = arith.constant 0 : i32
    return %arg0, %c0_i32, %c0_i32_0 : i32, i32, i32
  }
}

</mosaic_0001>

<bundles_post_ra>
// kernel: tpu_custom_call.1
= control target key start
LH: loop header
LB: loop body
LE: loop exit
PB: predicated region body
PF: predicated region fallthrough
CT: control target
= control target key end

     0   :  { %s1046_s0 = inlined_call_operand.vmem [shape: s32[16], index: 0, kind: input, shape index: {}]   ;;  %s1047_s1 = inlined_call_operand.vmem [shape: f32[64,32], index: 1, kind: input, shape index: {}]   ;;  %s1048_s2 = inlined_call_operand.vmem [shape: f32[8,32], index: 2, kind: input, shape index: {}]   ;;  %s1049_s3 = inlined_call_operand.hbm [shape: f32[2,8,32], index: 3, kind: output, shape index: {}]  }
   0x1   :  { %s8_s14 = sshll.u32 %s1046_s0, 4  ;;  %s9_s14 = int_to_ptr.vmem [resolvable:$true] %s8_s14 }
   0x2   :  { %s783_s15 = scalar_lea.vmem %s9_s14, 16  ;;  %p788_p1 = scmp.lt.s32.totalorder %s9_s14, %s9_s14 }
   0x3   :  { %p784_p0 = scmp.ne.s32.totalorder %s9_s14, %s783_s15  ;;  %p789_p2 = scmp.lt.s32.totalorder %s783_s15, %s783_s15 }
   0x5   :  { %p790_p3 = por %p789_p2, %p788_p1 }
   0x7   :  { %p791_p4 = pnand %p790_p3, %p784_p0 }
   0x9   :  { %794 = shalt.err (!%p791_p4)  }
   0xa   :  { %s877_s16 = smov [#allocation5]  }
   0xb   :  { %11 = dma.vmem_to_smem %s9_s14, 16, %s877_s16, [#allocation4] }
   0xc   :  { %839 = dma.done.wait [#allocation4], 16 }
   0xd   :  { %840 = vsyncadd [#allocation4], 4294967280 }
   0xe   :  { %13 = sfence }
   0xf   :  { %14 = vsyncpa [#allocation7], 0 }
  0x10   :  { %16 = vsyncpa [#allocation7 + $0x1], 0  ;;  %s902_s17 = smov 0   ;;  %s904_s18 = smov 0  }
  0x11   :  { %s906_s0 = smov 0   ;;  %s908_s19 = smov 0  }
  0x12 LB: > { %s923_s20 = sadd.s32 4294967295, %s875_s19   ;;  %s726_s21 = sadd.s32 4294967294, %s875_s19   ;;  %s875_s19 = sphi %s908_s19, %s1055_s19   ;;  %s871_s0 = sphi %s906_s0, %s1054_s0   ;;  %s867_s18 = sphi %s904_s18, %s1053_s18   ;;  %s863_s17 = sphi %s902_s17, %s1052_s17  }
  0x13   : > { %s927_s22 = sadd.s32 1, %s875_s19   ;;  %s50_s23 = sadd.s32 1, %s871_s0 }
  0x14   : > { %s47_s24 = ssub.s32 %s875_s19, %s927_s22  ;;  %p60_p5 = scmp.ne.s32.totalorder %s871_s0, %s867_s18 }
  0x15   : > { %p48_p6 = scmp.eq.s32.totalorder %s47_s24, 0  ;;  %p61_p7 = scmp.eq.s32.totalorder %s923_s20, 1 }
  0x16   : > { %p66_p8 = scmp.ne.s32.totalorder %s867_s18, %s863_s17  ;;  %p67_p9 = scmp.eq.s32.totalorder %s726_s21, 1 }
  0x17   : > { %s938_s25 = scalar_select %p48_p6, %s871_s0, %s50_s23  }
  0x18   : > { %p940_p10 = por %p61_p7, %p60_p5  ;;  %p944_p11 = por %p67_p9, %p66_p8 }
  0x19   : > { %p728_p12 = scmp.ge.s32.totalorder %s875_s19, 1  ;;  %p88_p13 = scmp.lt.s32.totalorder %s875_s19, 3 }
  0x1b   : > { %p89_p0 = pnand %p728_p12, %p88_p13 }
  0x1c   : > { %s100_s28 = sand.u32 (!%p89_p0), 1, %s867_s18   ;;  %s952_s29 = sshll.u32 (!%p89_p0), %s923_s20, 3 }
  0x1d   : > { %92 = sbr.rel (%p89_p0) target bundleno = 149 (0x95), region = 24  ;;  %s956_s30 = sshll.u32 (!%p89_p0), %s100_s28, 3 }
  0x1e   : > { %s104_s4 = sld [smem:[#allocation5 + %s952_s29]] (!%p89_p0)  ;;  %s102_s8 = scalar_lea.vmem (!%p89_p0), [#allocation6], %s956_s30 }
  0x24   : > { %s105_s7 = scalar_lea.vmem %s1047_s1, %s104_s4 }
  0x25   : > { %v123_v0 = vld [vmem:[%s105_s7] sm:$0x1] }
  0x26   : > { %124 = vst [vmem:[#allocation2] sm:$0x1] %v123_v0 }
  0x27   : > { %149 = vsyncadd [#allocation3], 16  ;;  %s150_s9 = sadd.s32 1, %s952_s29 }
  0x28   : > { %s151_s10 = sld [smem:[#allocation5 + %s150_s9]] }
  0x2e   : > { %s152_s13 = scalar_lea.vmem %s1047_s1, %s151_s10 }
  0x2f   : > { %v172_v1 = vld [vmem:[%s152_s13] sm:$0x1] }
  0x30   : > { %173 = vst [vmem:[#allocation2 + $0x1] sm:$0x1] %v172_v1 }
  0x31   : > { %198 = vsyncadd [#allocation3 + $0x1], 16  ;;  %s199_s14 = sadd.s32 2, %s952_s29 }
  0x32   : > { %s200_s15 = sld [smem:[#allocation5 + %s199_s14]] }
  0x38   : > { %s201_s23 = scalar_lea.vmem %s1047_s1, %s200_s15 }
  0x39   : > { %v221_v2 = vld [vmem:[%s201_s23] sm:$0x1] }
  0x3a   : > { %222 = vst [vmem:[#allocation2 + $0x2] sm:$0x1] %v221_v2 }
  0x3b   : > { %247 = vsyncadd [#allocation3 + $0x2], 16  ;;  %s248_s24 = sadd.s32 3, %s952_s29 }
  0x3c   : > { %s249_s4 = sld [smem:[#allocation5 + %s248_s24]] }
  0x42   : > { %s250_s7 = scalar_lea.vmem %s1047_s1, %s249_s4 }
  0x43   : > { %v270_v3 = vld [vmem:[%s250_s7] sm:$0x1] }
  0x44   : > { %271 = vst [vmem:[#allocation2 + $0x3] sm:$0x1] %v270_v3 }
  0x45   : > { %296 = vsyncadd [#allocation3 + $0x3], 16  ;;  %s297_s9 = sadd.s32 4, %s952_s29 }
  0x46   : > { %s298_s10 = sld [smem:[#allocation5 + %s297_s9]] }
  0x4c   : > { %s299_s13 = scalar_lea.vmem %s1047_s1, %s298_s10 }
  0x4d   : > { %v319_v4 = vld [vmem:[%s299_s13] sm:$0x1] }
  0x4e   : > { %320 = vst [vmem:[#allocation2 + $0x4] sm:$0x1] %v319_v4 }
  0x4f   : > { %345 = vsyncadd [#allocation3 + $0x4], 16  ;;  %s346_s14 = sadd.s32 5, %s952_s29 }
  0x50   : > { %s347_s15 = sld [smem:[#allocation5 + %s346_s14]] }
  0x56   : > { %s348_s23 = scalar_lea.vmem %s1047_s1, %s347_s15 }
  0x57   : > { %v368_v5 = vld [vmem:[%s348_s23] sm:$0x1] }
  0x58   : > { %369 = vst [vmem:[#allocation2 + $0x5] sm:$0x1] %v368_v5 }
  0x59   : > { %394 = vsyncadd [#allocation3 + $0x5], 16  ;;  %s395_s24 = sadd.s32 6, %s952_s29 }
  0x5a   : > { %s396_s4 = sld [smem:[#allocation5 + %s395_s24]] }
  0x60   : > { %s397_s7 = scalar_lea.vmem %s1047_s1, %s396_s4 }
  0x61   : > { %v417_v6 = vld [vmem:[%s397_s7] sm:$0x1] }
  0x62   : > { %418 = vst [vmem:[#allocation2 + $0x6] sm:$0x1] %v417_v6 }
  0x63   : > { %443 = vsyncadd [#allocation3 + $0x6], 16  ;;  %s444_s9 = sadd.s32 7, %s952_s29 }
  0x64   : > { %s445_s10 = sld [smem:[#allocation5 + %s444_s9]] }
  0x6a   : > { %s446_s13 = scalar_lea.vmem %s1047_s1, %s445_s10 }
  0x6b   : > { %v466_v7 = vld [vmem:[%s446_s13] sm:$0x1] }
  0x6c   : > { %467 = vst [vmem:[#allocation2 + $0x7] sm:$0x1] %v466_v7 }
  0x6d   : > { %492 = vsyncadd [#allocation3 + $0x7], 16 }
  0x6e   : > { %841 = dma.done.wait [#allocation3], 16 }
  0x6f   : > { %842 = vsyncadd [#allocation3], 4294967280 }
  0x70   : > { %843 = dma.done.wait [#allocation3 + $0x1], 16 }
  0x71   : > { %844 = vsyncadd [#allocation3 + $0x1], 4294967280 }
  0x72   : > { %845 = dma.done.wait [#allocation3 + $0x2], 16 }
  0x73   : > { %846 = vsyncadd [#allocation3 + $0x2], 4294967280 }
  0x74   : > { %847 = dma.done.wait [#allocation3 + $0x3], 16 }
  0x75   : > { %848 = vsyncadd [#allocation3 + $0x3], 4294967280 }
  0x76   : > { %849 = dma.done.wait [#allocation3 + $0x4], 16 }
  0x77   : > { %850 = vsyncadd [#allocation3 + $0x4], 4294967280 }
  0x78   : > { %851 = dma.done.wait [#allocation3 + $0x5], 16 }
  0x79   : > { %852 = vsyncadd [#allocation3 + $0x5], 4294967280 }
  0x7a   : > { %853 = dma.done.wait [#allocation3 + $0x6], 16 }
  0x7b   : > { %854 = vsyncadd [#allocation3 + $0x6], 4294967280 }
  0x7c   : > { %855 = dma.done.wait [#allocation3 + $0x7], 16 }
  0x7d   : > { %856 = vsyncadd [#allocation3 + $0x7], 4294967280  ;;  %s732_s29 = sshll.u32 %s923_s20, 7  ;;  %s529_s14 = sshll.u32 %s102_s8, 4  ;;  %v510_v8 = vld [vmem:[#allocation2] sm:$0xff]  ;;  %vm513_vm0 = vcmask 261120   ;;  %s1002_s14 = int_to_ptr.vmem [resolvable:$true] %s529_s14 }
  0x7e   : > { %v511_v9 = vld [vmem:[%s1048_s2] sm:$0xff]  ;;  %s1000_s24 = scalar_lea.hbm %s1049_s3, %s732_s29  ;;  %s516_s20 = scalar_lea.sflag [#allocation7], %s100_s28 }
  0x7f   : > { %v512_v10 = vadd.f32 %v511_v9, %v510_v8  ;;  %s795_s4 = scalar_lea.vmem %s1002_s14, 128  ;;  %s878_s5 = smov [#allocation6]  }
  0x80   : > { %p796_p1 = scmp.ne.s32.totalorder %s1002_s14, %s795_s4  ;;  %s799_s6 = sshll.u32 %s878_s5, 4  ;;  %s800_s6 = int_to_ptr.vmem [resolvable:$false] %s799_s6 }
  0x81   : > { %514 = vst.msk [vmem:[%s102_s8] sm:$0xff] %vm513_vm0, %v512_v10  ;;  %s801_s7 = scalar_lea.vmem %s800_s6, 256  ;;  %p802_p4 = scmp.lt.s32.totalorder %s1002_s14, %s800_s6 }
  0x82   : > { %p797_p2 = pnand %p796_p1, %p940_p10  ;;  %p803_p5 = scmp.lt.s32.totalorder %s801_s7, %s795_s4 }
  0x84   : > { %p798_p3 = pneg %p797_p2  ;;  %p804_p6 = por %p803_p5, %p802_p4 }
  0x86   : > { %p805_p7 = pnand %p804_p6, %p798_p3 }
  0x88   : > { %808 = shalt.err (!%p805_p7)
}
  0x89   : > { %s809_s28 = scalar_lea.hbm %s1000_s24, 128  ;;  %s813_s9 = scalar_lea.hbm %s1049_s3, 256 }
  0x8a   : > { %p810_p8 = scmp.ne.s32.totalorder %s1000_s24, %s809_s28  ;;  %p814_p13 = scmp.lt.u32.totalorder %s1000_s24, %s1049_s3 }
  0x8b   : > { %p815_p0 = scmp.lt.u32.totalorder %s813_s9, %s809_s28  ;;  %p817_p2 = scmp.lt.u32.totalorder %s809_s28, %s1000_s24 }
  0x8c   : > { %p811_p9 = pnand %p810_p8, %p940_p10 }
  0x8d   : > { %p816_p1 = por %p815_p0, %p814_p13 }
  0x8e   : > { %p812_p12 = pneg %p811_p9 }
  0x8f   : > { %p818_p3 = por %p817_p2, %p816_p1 }
  0x91   : > { %p819_p4 = pnand %p818_p3, %p812_p12 }
  0x93   : > { %822 = shalt.err (!%p819_p4)
}
  0x94   : > { %743 = dma.vmem_to_hbm [thread:$0]  (%p940_p10), %s1002_s14, 128, %s1000_s24, %s516_s20  }
  0x95 PF: > { %p749_p5 = scmp.ge.s32.totalorder %s875_s19, 2  ;;  %s541_s12 = sand.u32 1, %s863_s17  }
  0x96   : > { %s542_s13 = scalar_lea.sflag [#allocation7], %s541_s12 }
  0x97   : > { %p746_p6 = pnand %p749_p5, %p944_p11 }
  0x99   : > { %858 = dma.done.wait (!%p746_p6), %s542_s13, 128  }
  0x9a   : > { %860 = vsyncadd (!%p746_p6), %s542_s13, 4294967168  ;;  %p19_p7 = scmp.ge.s32.totalorder %s927_s22, 4   ;;  %s1052_s17 = smov %s867_s18 }
  0x9b   : > { %s1053_s18 = smov %s871_s0  ;;  %s1054_s0 = smov %s938_s25 }
  0x9c   : > { %s1055_s19 = smov %s927_s22  ;;  %21 = sbr.rel (!%p19_p7) target bundleno = 18 (0x12), region = 405 }
  0xa3   :  { %547 = vsyncpa [#allocation7], 1 }
  0xa4   :  { %549 = vsyncpa [#allocation7 + $0x1], 1 }
  0xa5   :  { %550 = vsyncmov [#allocation3] }
  0xa8   :  { %s551_s19 = vpop.sfrf %550 }
  0xa9   :  { %p735_p10 = scmp.ne.s32.totalorder %s551_s19, 0 }
  0xab   :  { %555 = shalt.err (%p735_p10)  }
  0xac   :  { %557 = vsyncmov [#allocation3 + $0x1] }
  0xaf   :  { %s558_s26 = vpop.sfrf %557 }
  0xb0   :  { %p736_p11 = scmp.ne.s32.totalorder %s558_s26, 0 }
  0xb2   :  { %562 = shalt.err (%p736_p11)  }
  0xb3   :  { %564 = vsyncmov [#allocation3 + $0x2] }
  0xb6   :  { %s565_s27 = vpop.sfrf %564 }
  0xb7   :  { %p737_p8 = scmp.ne.s32.totalorder %s565_s27, 0 }
  0xb9   :  { %569 = shalt.err (%p737_p8)  }
  0xba   :  { %571 = vsyncmov [#allocation3 + $0x3] }
  0xbd   :  { %s572_s29 = vpop.sfrf %571 }
  0xbe   :  { %p738_p9 = scmp.ne.s32.totalorder %s572_s29, 0 }
  0xc0   :  { %576 = shalt.err (%p738_p9)  }
  0xc1   :  { %578 = vsyncmov [#allocation3 + $0x4] }
  0xc4   :  { %s579_s22 = vpop.sfrf %578 }
  0xc5   :  { %p739_p12 = scmp.ne.s32.totalorder %s579_s22, 0 }
  0xc7   :  { %583 = shalt.err (%p739_p12)  }
  0xc8   :  { %585 = vsyncmov [#allocation3 + $0x5] }
  0xcb   :  { %s586_s1 = vpop.sfrf %585 }
  0xcc   :  { %p740_p13 = scmp.ne.s32.totalorder %s586_s1, 0 }
  0xce   :  { %590 = shalt.err (%p740_p13)  }
  0xcf   :  { %592 = vsyncmov [#allocation3 + $0x6] }
  0xd2   :  { %s593_s2 = vpop.sfrf %592 }
  0xd3   :  { %p741_p0 = scmp.ne.s32.totalorder %s593_s2, 0 }
  0xd5   :  { %597 = shalt.err (%p741_p0)  }
  0xd6   :  { %599 = vsyncmov [#allocation3 + $0x7] }
  0xd9   :  { %s600_s3 = vpop.sfrf %599 }
  0xda   :  { %p742_p1 = scmp.ne.s32.totalorder %s600_s3, 0 }
  0xdc   :  { %604 = shalt.err (%p742_p1)  }

</bundles_post_ra>
